<compile_context>
chip_gen: v5e
topology: v5e:2x2
jax: 0.10.0
libtpu: 0.0.40
codegen_flags: <defaults>
</compile_context>

<pallas_src>
import numpy as np
import jax
import jax.numpy as jnp
from jax.experimental import pallas as pl
from jax.experimental.pallas import tpu as pltpu


# ----------------------------------------------------------------------------
# Pallas kernel: fused xPos application to q and k (4 table streams)
# ----------------------------------------------------------------------------
def _xpos_kernel(q_ref, k_ref, cs_ref, ssl_ref, ci_ref, sil_ref, qo_ref, ko_ref):
    f32 = jnp.float32
    q = q_ref[...].astype(f32)          # (1, Rt, C)
    k = k_ref[...].astype(f32)
    cs = cs_ref[...].astype(f32)        # cos * scale
    ssl = ssl_ref[...].astype(f32)      # -sin * scale on even lanes, 0 on odd
    ci = ci_ref[...].astype(f32)        # cos / scale
    sil = sil_ref[...].astype(f32)      # -sin / scale on even lanes, 0 on odd

    C = q.shape[-1]
    # XLU rolls (free slot in this HBM/VPU-bound kernel).
    # x_nxt[j] = x[j+1]; x_prv[j] = x[j-1]; wrap elements always multiply a zeroed
    # table entry (C is even, parity-masked coefficients), so rows are independent.
    q_nxt = pltpu.roll(q, shift=C - 1, axis=2)
    q_prv = pltpu.roll(q, shift=1, axis=2)
    k_nxt = pltpu.roll(k, shift=C - 1, axis=2)
    k_prv = pltpu.roll(k, shift=1, axis=2)

    # Odd-lane coefficients synthesized in-kernel: ssr = -roll(ssl, 1),
    # sir = -roll(sil, 1) (exact: parity masking + pairwise-repeated sin/scale).
    # The minus sign is folded into the final subtract -> 2 fewer HBM streams.
    ssr = pltpu.roll(ssl, shift=1, axis=2)
    sir = pltpu.roll(sil, shift=1, axis=2)

    qo_ref[...] = (q * cs + q_nxt * ssl - q_prv * ssr).astype(qo_ref.dtype)
    ko_ref[...] = (k * ci + k_nxt * sil - k_prv * sir).astype(ko_ref.dtype)


# ----------------------------------------------------------------------------
# Layout helpers
# ----------------------------------------------------------------------------
def _pick_layout(n_flat, sublane_mult=8):
    """Pick lane width C (multiple of 128 dividing n_flat) and rows R = n_flat // C.
    Prefer R a multiple of the sublane packing factor (8 f32 / 16 bf16 / 32 int8)."""
    fallback8 = None
    fallback = None
    for c in (1024, 512, 256, 128):
        if n_flat % c:
            continue
        r = n_flat // c
        if r % sublane_mult == 0:
            return c, r
        if fallback8 is None and r % 8 == 0:
            fallback8 = (c, r)
        if fallback is None:
            fallback = (c, r)
    if fallback8 is not None:
        return fallback8
    if fallback is not None:
        return fallback
    # TODO(synk): n_flat not a multiple of 128 -> lane dim == full dim, which produces
    # masked partial stores; consider padding head_dim/seq upstream instead.
    return n_flat, 1


def _pick_row_tile(rows, lanes, elem_bytes, sublane_mult=8, budget_bytes=1 << 20):
    """Largest row tile dividing `rows`, preferring multiples of `sublane_mult`
    (falling back to multiples of 8 or the full extent, which the (8,128) block
    constraint requires), with the per-stream tile kept under ~1 MiB."""
    max_rows = max(1, budget_bytes // (lanes * elem_bytes))
    fallback = None
    for rt in range(min(rows, max_rows), 0, -1):
        if rows % rt:
            continue
        if rt % sublane_mult == 0:
            return rt
        if fallback is None and (rt % 8 == 0 or rt == rows):
            fallback = rt
    return fallback if fallback is not None else rows


# ----------------------------------------------------------------------------
# One-time table fusion (hoisted out of the per-call path, cached by the module)
# ----------------------------------------------------------------------------
def fuse_xpos_tables(cos, sin, scale, table_dtype=jnp.float32):
    """Fuse scale into the cos/sin tables. Returns (cs, ssl, ci, sil), each flat (S*D,).

      cs  = cos * scale                 ci  = cos / scale
      ssl = -sin * scale  (even lanes)  sil = -sin / scale  (even lanes), 0 on odd lanes.

    The odd-lane coefficients (ssr/sir) are synthesized inside the kernel."""
    f32 = jnp.float32
    n = cos.shape[-2] * cos.shape[-1]
    cos_f = cos.astype(f32).reshape(n)
    sin_f = sin.astype(f32).reshape(n)
    scl_f = scale.astype(f32).reshape(n)
    even = (jnp.arange(n) % 2) == 0

    cs = cos_f * scl_f
    ci = cos_f / scl_f
    ssl = jnp.where(even, -sin_f * scl_f, 0.0)
    sil = jnp.where(even, -sin_f / scl_f, 0.0)
    td = jnp.dtype(table_dtype)
    return tuple(t.astype(td) for t in (cs, ssl, ci, sil))


# ----------------------------------------------------------------------------
# pallas_call wrapper
# ----------------------------------------------------------------------------
def xpos_apply(q, k, fused_tables, *, row_tile_budget_bytes=1 << 20,
               vmem_limit_bytes=32 << 20):
    """q, k: (B, S, D); fused_tables: (cs, ssl, ci, sil) each with S*D elements."""
    B, S, D = q.shape
    assert D % 2 == 0, "head_dim must be even (rotate_every_two pairs (2i, 2i+1))"
    N = S * D
    cs, ssl, ci, sil = (t.reshape(N) for t in fused_tables)

    q_bytes = jnp.dtype(q.dtype).itemsize
    min_bytes = min(q_bytes, jnp.dtype(cs.dtype).itemsize)
    sublane_mult = 8 * max(1, 4 // min_bytes)        # f32:8, bf16:16, int8/fp8:32

    # Lane-dense layout: last dim a multiple of 128 -> unmasked vst.
    C, R = _pick_layout(N, sublane_mult)
    Rt = _pick_row_tile(R, C, q_bytes, sublane_mult, row_tile_budget_bytes)

    q3 = q.reshape(B, R, C)
    k3 = k.reshape(B, R, C)
    tables = [t.reshape(1, R, C) for t in (cs, ssl, ci, sil)]

    # Grid = (row_tiles, B): batch is the fastest-varying axis, and the table
    # index_map ignores it, so each table block is DMA'd once per row tile
    # (reused across all batches) instead of once per batch.
    qk_spec = pl.BlockSpec((1, Rt, C), lambda r, b: (b, r, 0))
    tbl_spec = pl.BlockSpec((1, Rt, C), lambda r, b: (0, r, 0))

    q_out, k_out = pl.pallas_call(
        _xpos_kernel,
        out_shape=(jax.ShapeDtypeStruct((B, R, C), q.dtype),
                   jax.ShapeDtypeStruct((B, R, C), k.dtype)),
        grid=(R // Rt, B),
        in_specs=[qk_spec, qk_spec, tbl_spec, tbl_spec, tbl_spec, tbl_spec],
        out_specs=(qk_spec, qk_spec),
        compiler_params=pltpu.CompilerParams(
            dimension_semantics=("parallel", "parallel"),
            vmem_limit_bytes=vmem_limit_bytes),
    )(q3, k3, *tables)

    return q_out.reshape(B, S, D), k_out.reshape(B, S, D)


# ----------------------------------------------------------------------------
# Table construction (mirrors XPosEmbedding2D.cos_sin) + module-style wrapper
# ----------------------------------------------------------------------------
def build_xpos_tables(head_dim, token_shape, base=50000.0, scale_base=512.0,
                      dtype=jnp.float32):
    half_dim = head_dim // 2
    idx = jnp.arange(0, half_dim, 2, dtype=jnp.float32)
    inv_freq = 1.0 / (base ** (idx / half_dim))                        # (half_dim//2,)
    scale_vec = (idx + 0.4 * half_dim) / (1.4 * half_dim)              # (half_dim//2,)

    H, W = token_shape
    y = jnp.arange(H, dtype=jnp.float32)
    x = jnp.arange(W, dtype=jnp.float32)
    xg, yg = jnp.meshgrid(x, y, indexing="xy")                         # (H, W) each
    y_flat = yg.reshape(-1)                                            # (H*W,)
    x_flat = xg.reshape(-1)

    y_freqs = y_flat[:, None] * inv_freq[None, :]                      # (HW, half//2)
    x_freqs = x_flat[:, None] * inv_freq[None, :]
    y_scales = scale_vec[None, :] ** (y_flat / scale_base)[:, None]
    x_scales = scale_vec[None, :] ** (x_flat / scale_base)[:, None]

    freqs = jnp.concatenate([y_freqs, x_freqs], axis=-1)               # (HW, half_dim)
    emb = jnp.repeat(freqs, 2, axis=-1)                                # (HW, head_dim)
    scales = jnp.concatenate([y_scales, x_scales], axis=-1)
    scales = jnp.repeat(scales, 2, axis=-1)                            # (HW, head_dim)

    cos = jnp.cos(emb)[None].astype(dtype)                             # (1, HW, head_dim)
    sin = jnp.sin(emb)[None].astype(dtype)
    scale = scales[None].astype(dtype)
    return cos, sin, scale


class XPosEmbedding2DPallas:
    """JAX/Pallas port of XPosEmbedding2D. The fused tables are built once per
    (token_shape, table_dtype) and cached, like the torch module's cos_sin cache."""

    def __init__(self, head_dim, base=50000.0, scale_base=512.0):
        self.head_dim = head_dim
        self.base = base
        self.scale_base = scale_base
        self._raw_cache = {}     # token_shape -> (cos, sin, scale) in f32
        self._fused_cache = {}   # (token_shape, dtype name) -> (cs, ssl, ci, sil)

    def cos_sin(self, token_shape, dtype=jnp.float32):
        if token_shape not in self._raw_cache:
            self._raw_cache[token_shape] = build_xpos_tables(
                self.head_dim, token_shape, self.base, self.scale_base, jnp.float32)
        cos, sin, scale = self._raw_cache[token_shape]
        return cos.astype(dtype), sin.astype(dtype), scale.astype(dtype)

    def fused_tables(self, token_shape, table_dtype):
        key = (token_shape, jnp.dtype(table_dtype).name)
        if key not in self._fused_cache:
            cos, sin, scale = self.cos_sin(token_shape, jnp.float32)
            self._fused_cache[key] = fuse_xpos_tables(cos, sin, scale, table_dtype)
        return self._fused_cache[key]

    def __call__(self, q, k, token_shape, table_dtype=None, **kw):
        # table_dtype=jnp.bfloat16 halves table bandwidth for f32 workloads if the
        # small quantization of cos*scale / cos/scale is acceptable.
        td = q.dtype if table_dtype is None else table_dtype
        return xpos_apply(q, k, self.fused_tables(token_shape, td), **kw)


# ----------------------------------------------------------------------------
# Pure-JAX reference (mirrors the PyTorch forward)
# ----------------------------------------------------------------------------
def _rotate_every_two_ref(x):
    x1 = x[:, :, ::2]
    x2 = x[:, :, 1::2]
    stacked = jnp.stack((-x2, x1), axis=-1)
    return stacked.reshape(x.shape)


def xpos_forward_ref(q, k, cos, sin, scale):
    q_out = q * cos * scale + _rotate_every_two_ref(q) * sin * scale
    k_out = k * cos * (1.0 / scale) + _rotate_every_two_ref(k) * sin * (1.0 / scale)
    return q_out, k_out


if __name__ == "__main__":
    key = jax.random.PRNGKey(0)
    kq, kk, kq2, kk2 = jax.random.split(key, 4)

    # ---- Test 1: f32, head_dim=32, token_shape=(8,8) -> S=64, C=256, R=8 ----
    head_dim, token_shape, batch = 32, (8, 8), 2
    seq_len = token_shape[0] * token_shape[1]
    q = jax.random.normal(kq, (batch, seq_len, head_dim), dtype=jnp.float32)
    k = jax.random.normal(kk, (batch, seq_len, head_dim), dtype=jnp.float32)

    mod = XPosEmbedding2DPallas(head_dim)
    q_out, k_out = mod(q, k, token_shape)
    jax.block_until_ready((q_out, k_out))

    cos, sin, scale = mod.cos_sin(token_shape, jnp.float32)
    q_ref, k_ref = xpos_forward_ref(q, k, cos, sin, scale)
    np.testing.assert_allclose(np.asarray(q_out), np.asarray(q_ref), rtol=1e-5, atol=1e-5)
    np.testing.assert_allclose(np.asarray(k_out), np.asarray(k_ref), rtol=1e-5, atol=1e-5)

    # ---- Test 2: bf16 I/O + tables, head_dim=64, token_shape=(16,16) -> multi-vreg
    # rows (C=1024), R=16, plus a small row-tile budget to force R//Rt > 1 so the
    # grid reorder / table-reuse path is exercised. ----
    head_dim2, token_shape2, batch2 = 64, (16, 16), 2
    seq_len2 = token_shape2[0] * token_shape2[1]
    q2 = jax.random.normal(kq2, (batch2, seq_len2, head_dim2), dtype=jnp.float32)
    k2 = jax.random.normal(kk2, (batch2, seq_len2, head_dim2), dtype=jnp.float32)
    q2_bf = q2.astype(jnp.bfloat16)
    k2_bf = k2.astype(jnp.bfloat16)

    mod2 = XPosEmbedding2DPallas(head_dim2)
    q2_out, k2_out = mod2(q2_bf, k2_bf, token_shape2, row_tile_budget_bytes=1 << 14)
    jax.block_until_ready((q2_out, k2_out))

    cos2, sin2, scale2 = mod2.cos_sin(token_shape2, jnp.float32)
    q2_ref, k2_ref = xpos_forward_ref(q2_bf.astype(jnp.float32),
                                      k2_bf.astype(jnp.float32), cos2, sin2, scale2)
    np.testing.assert_allclose(np.asarray(q2_out, dtype=np.float32), np.asarray(q2_ref),
                               rtol=3e-2, atol=3e-2)
    np.testing.assert_allclose(np.asarray(k2_out, dtype=np.float32), np.asarray(k2_ref),
                               rtol=3e-2, atol=3e-2)

    print("KERNEL_OK")
</pallas_src>

<mosaic_0001>
module attributes {stable_mosaic.version = 11 : i64} {
  func.func @_xpos_kernel(%arg0: i32, %arg1: i32, %arg2: memref<1x8x256xf32, #tpu.memory_space<vmem>>, %arg3: memref<1x8x256xf32, #tpu.memory_space<vmem>>, %arg4: memref<1x8x256xf32, #tpu.memory_space<vmem>>, %arg5: memref<1x8x256xf32, #tpu.memory_space<vmem>>, %arg6: memref<1x8x256xf32, #tpu.memory_space<vmem>>, %arg7: memref<1x8x256xf32, #tpu.memory_space<vmem>>, %arg8: memref<1x8x256xf32, #tpu.memory_space<vmem>>, %arg9: memref<1x8x256xf32, #tpu.memory_space<vmem>>) attributes {dimension_semantics = [#tpu.dimension_semantics<parallel>, #tpu.dimension_semantics<parallel>], iteration_bounds = array<i64: 1, 2>, scalar_prefetch = 0 : i64, scratch_operands = 0 : i64, tpu.core_type = #tpu.core_type<tc>, window_params = [{transform_indices = @transform_0, window_bounds = array<i64: 1, 8, 256>}, {transform_indices = @transform_1, window_bounds = array<i64: 1, 8, 256>}, {transform_indices = @transform_2, window_bounds = array<i64: 1, 8, 256>}, {transform_indices = @transform_3, window_bounds = array<i64: 1, 8, 256>}, {transform_indices = @transform_4, window_bounds = array<i64: 1, 8, 256>}, {transform_indices = @transform_5, window_bounds = array<i64: 1, 8, 256>}, {transform_indices = @transform_6, window_bounds = array<i64: 1, 8, 256>}, {transform_indices = @transform_7, window_bounds = array<i64: 1, 8, 256>}]} {
    %c0 = arith.constant 0 : index
    %c0_0 = arith.constant 0 : index
    %c0_1 = arith.constant 0 : index
    %0 = vector.load %arg2[%c0, %c0_0, %c0_1] : memref<1x8x256xf32, #tpu.memory_space<vmem>>, vector<1x8x256xf32>
    %c0_2 = arith.constant 0 : index
    %c0_3 = arith.constant 0 : index
    %c0_4 = arith.constant 0 : index
    %1 = vector.load %arg3[%c0_2, %c0_3, %c0_4] : memref<1x8x256xf32, #tpu.memory_space<vmem>>, vector<1x8x256xf32>
    %c0_5 = arith.constant 0 : index
    %c0_6 = arith.constant 0 : index
    %c0_7 = arith.constant 0 : index
    %2 = vector.load %arg4[%c0_5, %c0_6, %c0_7] : memref<1x8x256xf32, #tpu.memory_space<vmem>>, vector<1x8x256xf32>
    %c0_8 = arith.constant 0 : index
    %c0_9 = arith.constant 0 : index
    %c0_10 = arith.constant 0 : index
    %3 = vector.load %arg5[%c0_8, %c0_9, %c0_10] : memref<1x8x256xf32, #tpu.memory_space<vmem>>, vector<1x8x256xf32>
    %c0_11 = arith.constant 0 : index
    %c0_12 = arith.constant 0 : index
    %c0_13 = arith.constant 0 : index
    %4 = vector.load %arg6[%c0_11, %c0_12, %c0_13] : memref<1x8x256xf32, #tpu.memory_space<vmem>>, vector<1x8x256xf32>
    %c0_14 = arith.constant 0 : index
    %c0_15 = arith.constant 0 : index
    %c0_16 = arith.constant 0 : index
    %5 = vector.load %arg7[%c0_14, %c0_15, %c0_16] : memref<1x8x256xf32, #tpu.memory_space<vmem>>, vector<1x8x256xf32>
    %c255_i32 = arith.constant 255 : i32
    %6 = tpu.dynamic_rotate %0 by %c255_i32 dim 2 : vector<1x8x256xf32>, i32 -> vector<1x8x256xf32>
    %c1_i32 = arith.constant 1 : i32
    %7 = tpu.dynamic_rotate %0 by %c1_i32 dim 2 : vector<1x8x256xf32>, i32 -> vector<1x8x256xf32>
    %c255_i32_17 = arith.constant 255 : i32
    %8 = tpu.dynamic_rotate %1 by %c255_i32_17 dim 2 : vector<1x8x256xf32>, i32 -> vector<1x8x256xf32>
    %c1_i32_18 = arith.constant 1 : i32
    %9 = tpu.dynamic_rotate %1 by %c1_i32_18 dim 2 : vector<1x8x256xf32>, i32 -> vector<1x8x256xf32>
    %c1_i32_19 = arith.constant 1 : i32
    %10 = tpu.dynamic_rotate %3 by %c1_i32_19 dim 2 : vector<1x8x256xf32>, i32 -> vector<1x8x256xf32>
    %c1_i32_20 = arith.constant 1 : i32
    %11 = tpu.dynamic_rotate %5 by %c1_i32_20 dim 2 : vector<1x8x256xf32>, i32 -> vector<1x8x256xf32>
    %12 = arith.mulf %0, %2 : vector<1x8x256xf32>
    %13 = arith.mulf %6, %3 : vector<1x8x256xf32>
    %14 = arith.addf %12, %13 : vector<1x8x256xf32>
    %15 = arith.mulf %7, %10 : vector<1x8x256xf32>
    %16 = arith.subf %14, %15 : vector<1x8x256xf32>
    %c0_21 = arith.constant 0 : index
    %c0_22 = arith.constant 0 : index
    %c0_23 = arith.constant 0 : index
    %17 = vector.load %arg8[%c0_21, %c0_22, %c0_23] : memref<1x8x256xf32, #tpu.memory_space<vmem>>, vector<1x8x256xf32>
    tpu.vector_store %arg8[%c0_21, %c0_22, %c0_23], %16 {strides = array<i32>} : memref<1x8x256xf32, #tpu.memory_space<vmem>>, vector<1x8x256xf32>,
    %18 = arith.mulf %1, %4 : vector<1x8x256xf32>
    %19 = arith.mulf %8, %5 : vector<1x8x256xf32>
    %20 = arith.addf %18, %19 : vector<1x8x256xf32>
    %21 = arith.mulf %9, %11 : vector<1x8x256xf32>
    %22 = arith.subf %20, %21 : vector<1x8x256xf32>
    %c0_24 = arith.constant 0 : index
    %c0_25 = arith.constant 0 : index
    %c0_26 = arith.constant 0 : index
    %23 = vector.load %arg9[%c0_24, %c0_25, %c0_26] : memref<1x8x256xf32, #tpu.memory_space<vmem>>, vector<1x8x256xf32>
    tpu.vector_store %arg9[%c0_24, %c0_25, %c0_26], %22 {strides = array<i32>} : memref<1x8x256xf32, #tpu.memory_space<vmem>>, vector<1x8x256xf32>,
    return
  }
  func.func @transform_0(%arg0: i32, %arg1: i32) -> (i32, i32, i32) {
    %c0_i32 = arith.constant 0 : i32
    %c0_i32_0 = arith.constant 0 : i32
    return %arg1, %arg0, %c0_i32 : i32, i32, i32
  }
  func.func @transform_1(%arg0: i32, %arg1: i32) -> (i32, i32, i32) {
    %c0_i32 = arith.constant 0 : i32
    %c0_i32_0 = arith.constant 0 : i32
    return %arg1, %arg0, %c0_i32 : i32, i32, i32
  }
  func.func @transform_2(%arg0: i32, %arg1: i32) -> (i32, i32, i32) {
    %c0_i32 = arith.constant 0 : i32
    %c0_i32_0 = arith.constant 0 : i32
    %c0_i32_1 = arith.constant 0 : i32
    return %c0_i32, %arg0, %c0_i32_0 : i32, i32, i32
  }
  func.func @transform_3(%arg0: i32, %arg1: i32) -> (i32, i32, i32) {
    %c0_i32 = arith.constant 0 : i32
    %c0_i32_0 = arith.constant 0 : i32
    %c0_i32_1 = arith.constant 0 : i32
    return %c0_i32, %arg0, %c0_i32_0 : i32, i32, i32
  }
  func.func @transform_4(%arg0: i32, %arg1: i32) -> (i32, i32, i32) {
    %c0_i32 = arith.constant 0 : i32
    %c0_i32_0 = arith.constant 0 : i32
    %c0_i32_1 = arith.constant 0 : i32
    return %c0_i32, %arg0, %c0_i32_0 : i32, i32, i32
  }
  func.func @transform_5(%arg0: i32, %arg1: i32) -> (i32, i32, i32) {
    %c0_i32 = arith.constant 0 : i32
    %c0_i32_0 = arith.constant 0 : i32
    %c0_i32_1 = arith.constant 0 : i32
    return %c0_i32, %arg0, %c0_i32_0 : i32, i32, i32
  }
  func.func @transform_6(%arg0: i32, %arg1: i32) -> (i32, i32, i32) {
    %c0_i32 = arith.constant 0 : i32
    %c0_i32_0 = arith.constant 0 : i32
    return %arg1, %arg0, %c0_i32 : i32, i32, i32
  }
  func.func @transform_7(%arg0: i32, %arg1: i32) -> (i32, i32, i32) {
    %c0_i32 = arith.constant 0 : i32
    %c0_i32_0 = arith.constant 0 : i32
    return %arg1, %arg0, %c0_i32 : i32, i32, i32
  }
}

</mosaic_0001>

<bundles_post_ra>
// kernel: tpu_custom_call.1
= control target key start
LH: loop header
LB: loop body
LE: loop exit
PB: predicated region body
PF: predicated region fallthrough
CT: control target
= control target key end

     0   :  { %s1495_s0 = inlined_call_operand.hbm [shape: f32[2,8,256], index: 0, kind: input, shape index: {}]   ;;  %s1496_s1 = inlined_call_operand.hbm [shape: f32[2,8,256], index: 1, kind: input, shape index: {}]   ;;  %s1497_s2 = inlined_call_operand.hbm [shape: f32[1,8,256], index: 2, kind: input, shape index: {}]   ;;  %s1498_s3 = inlined_call_operand.hbm [shape: f32[1,8,256], index: 3, kind: input, shape index: {}]   ;;  %s1499_s4 = inlined_call_operand.hbm [shape: f32[1,8,256], index: 4, kind: input, shape index: {}]   ;;  %s1500_s5 = inlined_call_operand.hbm [shape: f32[1,8,256], index: 5, kind: input, shape index: {}]   ;;  %s1501_s6 = inlined_call_operand.hbm [shape: f32[2,8,256], index: 6, kind: output, shape index: {0}]   ;;  %s1502_s7 = inlined_call_operand.hbm [shape: f32[2,8,256], index: 7, kind: output, shape index: {1}]  }
   0x1   :  { %1506 = sst [smem:[#allocation27_spill]] %s1497_s2 }
   0x2   :  { %1507 = sst [smem:[#allocation28_spill]] %s1498_s3 }
   0x3   :  { %1508 = sst [smem:[#allocation29_spill]] %s1499_s4 }
   0x4   :  { %1509 = sst [smem:[#allocation30_spill]] %s1500_s5 }
   0x5   :  { %13 = vsyncpa [#allocation3], 0 }
   0x6   :  { %15 = vsyncpa [#allocation3 + $0x1], 0 }
   0x7   :  { %16 = vsyncpa [#allocation6], 0 }
   0x8   :  { %18 = vsyncpa [#allocation6 + $0x1], 0 }
   0x9   :  { %19 = vsyncpa [#allocation9], 0 }
   0xa   :  { %20 = vsyncpa [#allocation12], 0 }
   0xb   :  { %21 = vsyncpa [#allocation4], 0 }
   0xc   :  { %23 = vsyncpa [#allocation4 + $0x1], 0 }
   0xd   :  { %24 = vsyncpa [#allocation15], 0 }
   0xe   :  { %26 = vsyncpa [#allocation15 + $0x1], 0  ;;  %s1279_s24 = smov 0   ;;  %s1281_s25 = smov 0  }
   0xf   :  { %s1283_s26 = smov 0   ;;  %s1285_s27 = smov 0  }
  0x10   :  { %s1287_s28 = smov 0   ;;  %s1289_s29 = smov 0  }
  0x11 LB: > { %1510 = sst [smem:[#allocation23_spill]] %s1219_s26  ;;  %s1310_s30 = sadd.s32 4294967295, %s1231_s29   ;;  %s1231_s29 = sphi %s1289_s29, %s32_s29   ;;  %s1227_s28 = sphi %s1287_s28, %s1527_s28   ;;  %s1223_s27 = sphi %s1285_s27, %s1526_s27   ;;  %s1219_s26 = sphi %s1283_s26, %s1525_s26   ;;  %s1215_s25 = sphi %s1281_s25, %s1529_s25   ;;  %s1211_s24 = sphi %s1279_s24, %s1528_s24  }
  0x12   : > { %1511 = sst [smem:[#allocation24_spill]] %s1227_s28  ;;  %p773_p0 = scmp.ge.s32.totalorder %s1231_s29, 1 }
  0x13   : > { %p67_p1 = scmp.eq.s32.totalorder %s1310_s30, 0  ;;  %p265_p2 = scmp.lt.s32.totalorder %s1231_s29, 3 }
  0x14   : > { %s1512_s2 = sld [smem:[#allocation27_spill]]  ;;  %p778_p4 = scmp.ge.s32.totalorder %s1231_s29, 2 }
  0x15   : > { %p1318_p3 = pnand %p773_p0, %p265_p2  ;;  %s1233_s12 = smov [#allocation7]  }
  0x16   : > { %s282_s13 = sshll.u32 %s1233_s12, 4  ;;  %s1514_s3 = sld [smem:[#allocation28_spill]]  ;;  %s283_s13 = int_to_ptr.vmem [resolvable:$true] %s282_s13 }
  0x17   : > { %p830_p5 = pneg %p1318_p3  ;;  %s1516_s4 = sld [smem:[#allocation29_spill]] }
  0x18   : > { %s1234_s21 = smov [#allocation8]   ;;  %s1517_s5 = sld [smem:[#allocation30_spill]] }
  0x19   : > { %p1330_p6 = pnand %p830_p5, %p67_p1  ;;  %s297_s22 = sshll.u32 %s1234_s21, 4  ;;  %s298_s22 = int_to_ptr.vmem [resolvable:$true] %s297_s22 }
  0x1a   : > { %s280_s10 = sshll.u32 %s1512_s2, 4  ;;  %s1235_s12 = smov [#allocation10]   ;;  %s281_s10 = int_to_ptr.hbm [resolvable:$true] %s280_s10 }
  0x1b   : > { %833 = dma.hbm_to_vmem [thread:$0]  (!%p1330_p6), %s281_s10, 256, %s283_s13, [#allocation6]  }
  0x1c   : > { %s295_s16 = sshll.u32 %s1514_s3, 4  ;;  %s312_s14 = sshll.u32 %s1235_s12, 4  ;;  %s296_s16 = int_to_ptr.hbm [resolvable:$true] %s295_s16  ;;  %s313_s14 = int_to_ptr.vmem [resolvable:$true] %s312_s14 }
  0x1d   : > { %s310_s20 = sshll.u32 %s1516_s4, 4  ;;  %s1236_s10 = smov [#allocation11]   ;;  %s311_s20 = int_to_ptr.hbm [resolvable:$true] %s310_s20 }
  0x1e   : > { %836 = dma.hbm_to_vmem [thread:$0]  (!%p1330_p6), %s296_s16, 256, %s298_s22, [#allocation9]  }
  0x1f   : > { %s325_s9 = sshll.u32 %s1517_s5, 4  ;;  %s327_s13 = sshll.u32 %s1236_s10, 4  ;;  %s326_s9 = int_to_ptr.hbm [resolvable:$true] %s325_s9  ;;  %s328_s13 = int_to_ptr.vmem [resolvable:$true] %s327_s13 }
  0x20   : > { %839 = dma.hbm_to_vmem [thread:$0]  (!%p1330_p6), %s311_s20, 256, %s313_s14, [#allocation9]  }
  0x21   : > { %842 = dma.hbm_to_vmem [thread:$0]  (!%p1330_p6), %s326_s9, 256, %s328_s13, [#allocation12]  }
  0x22   : > { %s772_s15 = sadd.s32 4294967294, %s1231_s29   ;;  %s41_s16 = sadd.s32 1, %s1227_s28 }
  0x23   : > { %p42_p7 = scmp.ge.s32.totalorder %s41_s16, 2  ;;  %s53_s18 = sadd.s32 1, %s1219_s26 }
  0x24   : > { %p60_p8 = scmp.ne.s32.totalorder %s1219_s26, %s1215_s25  ;;  %p61_p9 = scmp.eq.s32.totalorder %s1231_s29, 0 }
  0x25   : > { %s1531_s16 = smov (%p42_p7, %s41_s16), 0  ;;  %p66_p11 = scmp.ne.s32.totalorder %s1215_s25, %s1211_s24 }
  0x26   : > { %1518 = sst [smem:[#allocation25_spill]] %s1531_s16  ;;  %p1356_p10 = por %p61_p9, %p60_p8 }
  0x27   : > { %s48_s17 = ssub.s32 %s1227_s28, %s1531_s16  ;;  %p224_p12 = scmp.eq.s32.totalorder %s1310_s30, 1 }
  0x28   : > { %p51_p13 = scmp.eq.s32.totalorder %s48_s17, 0  ;;  %p1367_p0 = por %p67_p1, %p66_p11 }
  0x29   : > { %p1371_p2 = por %p224_p12, %p60_p8  ;;  %p230_p5 = scmp.eq.s32.totalorder %s772_s15, 1 }
  0x2a   : > { %s1376_s22 = scalar_select %p51_p13, %s1219_s26, %s53_s18  }
  0x2b   : > { %p1378_p6 = por %p230_p5, %p66_p11  ;;  %p861_p7 = scmp.lt.s32.totalorder %s1231_s29, 2 }
  0x2c   : > { %1522 = sst [smem:[#allocation26_spill]] %s1376_s22  ;;  %s338_s8 = sand.u32 1, %s1219_s26  }
  0x2d   : > { %s802_s9 = sshll.u32 %s1227_s28, 4  ;;  %s779_s12 = sshll.u32 %s338_s8, 4 }
  0x2e   : > { %s349_s13 = scalar_lea.hbm %s1495_s0, %s802_s9  ;;  %s342_s2 = scalar_lea.vmem [#allocation2], %s779_s12 }
  0x2f   : > { %s351_s17 = sshll.u32 %s349_s13, 4  ;;  %s353_s3 = sshll.u32 %s342_s2, 4  ;;  %s352_s17 = int_to_ptr.hbm [resolvable:$true] %s351_s17  ;;  %s354_s3 = int_to_ptr.vmem [resolvable:$true] %s353_s3 }
  0x30   : > { %p844_p8 = pnand %p861_p7, %p1356_p10  ;;  %s371_s4 = scalar_lea.hbm %s1496_s1, %s802_s9 }
  0x31   : > { %s360_s5 = sand.u32 1, %s1231_s29   ;;  %s339_s16 = scalar_lea.sflag [#allocation3], %s338_s8 }
  0x32   : > { %846 = dma.hbm_to_vmem [thread:$0]  (!%p844_p8), %s352_s17, 256, %s354_s3, %s339_s16  }
  0x33   : > { %s373_s28 = sshll.u32 %s371_s4, 4  ;;  %s364_s22 = scalar_lea.vmem [#allocation5], %s779_s12  ;;  %s374_s28 = int_to_ptr.hbm [resolvable:$true] %s373_s28 }
  0x34   : > { %s375_s26 = sshll.u32 %s364_s22, 4  ;;  %s361_s14 = scalar_lea.sflag [#allocation6], %s360_s5  ;;  %s376_s26 = int_to_ptr.vmem [resolvable:$true] %s375_s26 }
  0x35   : > { %849 = dma.hbm_to_vmem [thread:$0]  (!%p844_p8), %s374_s28, 256, %s376_s26, %s361_s14  }
  0x36   : > { %384 = sbr.rel (%p1318_p3) target bundleno = 231 (0xe7), region = 44  ;;  %s1397_s2 = sand.u32 (!%p1318_p3), 1, %s1215_s25  }
  0x37   : > { %s1400_s19 = sshll.u32 (!%p1318_p3), %s1397_s2, 4  ;;  %s387_s3 = scalar_lea.sflag (!%p1318_p3), [#allocation3], %s1397_s2 }
  0x38   : > { %s390_s4 = scalar_lea.vmem (!%p1318_p3), [#allocation2], %s1400_s19 }
  0x3b   : > { %1182 = dma.done.wait (%p1367_p0), %s387_s3, 256  }
  0x3c   : > { %1184 = vsyncadd (%p1367_p0), %s387_s3, 4294967040  ;;  %s396_s5 = sand.u32 1, %s1310_s30   ;;  %s400_s28 = scalar_lea.vmem [#allocation5], %s1400_s19 }
  0x3d   : > { %s397_s26 = scalar_lea.sflag [#allocation6], %s396_s5 }
  0x3e   : > { %1186 = dma.done.wait (%p1367_p0), %s397_s26, 256  }
  0x3f   : > { %1188 = vsyncadd (%p1367_p0), %s397_s26, 4294967040 }
  0x40   : > { %1190 = dma.done.wait (%p67_p1), [#allocation6], 256  }
  0x41   : > { %1192 = vsyncadd (%p67_p1), [#allocation6], 4294967040 }
  0x42   : > { %1194 = dma.done.wait (%p67_p1), [#allocation9], 512  }
  0x43   : > { %1196 = vsyncadd (%p67_p1), [#allocation9], 4294966784 }
  0x44   : > { %1198 = dma.done.wait (%p67_p1), [#allocation12], 256  }
  0x45   : > { %1200 = vsyncadd (%p67_p1), [#allocation12], 4294967040  ;;  %v464_v0 = vld [vmem:[%s400_s28] sm:$0xff]  ;;  %s1237_s11 = smov 127   ;;  %s1238_s16 = smov 1   ;;  %v465_v2 = vld [vmem:[%s400_s28 + $0x8] sm:$0xff]  ;;  %v478_v12 = vlaneseq }
  0x46   : > { %v462_v1 = vld [vmem:[%s390_s4] sm:$0xff]  ;;  %490 = vrot.lane.b32.xlu1 %v464_v0, %s1237_s11  ;;  %v463_v3 = vld [vmem:[%s390_s4 + $0x8] sm:$0xff]  ;;  %s804_s30 = sshll.u32 %s1223_s27, 4  ;;  %s454_s10 = scalar_lea.vmem [#allocation13], %s1400_s19 }
  0x47   : > { %474 = vrot.lane.b32.xlu0 %v462_v1, %s1237_s11  ;;  %483 = vrot.lane.b32.xlu2 %v462_v1, %s1238_s16  ;;  %v468_v4 = vld [vmem:[#allocation8] sm:$0xff]  ;;  %v469_v6 = vld [vmem:[#allocation8 + $0x8] sm:$0xff]  ;;  %v479_v15 = vand.u32 127, %v478_v12  ;;  %v470_v17 = vld [vmem:[#allocation10] sm:$0xff]  ;;  %s557_s8 = scalar_lea.hbm %s1501_s6, %s804_s30  ;;  %s574_s12 = scalar_lea.hbm %s1502_s7, %s804_s30 }
  0x48   : > { %v472_v5 = vld [vmem:[#allocation11] sm:$0xff]  ;;  %v473_v7 = vld [vmem:[#allocation11 + $0x8] sm:$0xff]  ;;  %v466_v18 = vld [vmem:[#allocation7] sm:$0xff]  ;;  %v526_v25 = vmul.f32 %v470_v17, %v464_v0  ;;  %s559_s13 = sshll.u32 %s454_s10, 4  ;;  %s561_s17 = sshll.u32 %s557_s8, 4  ;;  %s560_s13 = int_to_ptr.vmem [resolvable:$true] %s559_s13  ;;  %s562_s17 = int_to_ptr.hbm [resolvable:$true] %s561_s17 }
  0x49   : > { %vm480_vm0 = vcmp.lt.s32.totalorder %v479_v15, 127  ;;  %v467_v19 = vld [vmem:[#allocation7 + $0x8] sm:$0xff]  ;;  %v514_v26 = vmul.f32 %v466_v18, %v462_v1  ;;  %vm487_vm1 = vcmp.lt.s32.totalorder %v479_v15, 1  ;;  %s461_s15 = scalar_lea.vmem [#allocation14], %s1400_s19  ;;  %s578_s14 = sshll.u32 %s574_s12, 4  ;;  %s1445_s14 = int_to_ptr.hbm [resolvable:$true] %s578_s14 }
  0x4a   : > { %v471_v27 = vld [vmem:[#allocation10 + $0x8] sm:$0xff]  ;;  %v515_v28 = vmul.f32 %v467_v19, %v463_v3  ;;  %s576_s18 = sshll.u32 %s461_s15, 4  ;;  %s539_s3 = scalar_lea.sflag [#allocation4], %s1397_s2  ;;  %s1443_s18 = int_to_ptr.vmem [resolvable:$true] %s576_s18 }
  0x4b   : > { %v527_v33 = vmul.f32 %v471_v27, %v465_v2  ;;  %s1115_s4 = sshra.s32 %s562_s17, 4  ;;  %s1121_s28 = scalar_lea.hbm %s1501_s6, 32  ;;  %s1116_s4 = int_to_ptr.hbm [resolvable:$true] %s1115_s4 }
  0x4c   : > { %s1117_s5 = scalar_lea.hbm %s1116_s4, 16  ;;  %p1122_p10 = scmp.lt.s32.totalorder %s1116_s4, %s1501_s6 }
  0x4d   : > { %p1118_p1 = scmp.ne.s32.totalorder %s1116_s4, %s1117_s5  ;;  %p1123_p11 = scmp.lt.s32.totalorder %s1121_s28, %s1117_s5 }
  0x4e   : > { %492 = vrot.lane.b32.xlu1 %v465_v2, %s1237_s11 }
  0x4f   : > { %476 = vrot.lane.b32.xlu0 %v463_v3, %s1237_s11  ;;  %485 = vrot.lane.b32.xlu2 %v463_v3, %s1238_s16  ;;  %p1119_p3 = pnand %p1118_p1, %p1371_p2  ;;  %p1124_p12 = por %p1123_p11, %p1122_p10 }
  0x51   : > { %p1120_p9 = pneg %p1119_p3 }
  0x53   : > { %p1125_p13 = pnand %p1124_p12, %p1120_p9 }
  0x56   : > { %498 = vrot.lane.b32.xlu1 %v465_v2, %s1238_s16 }
  0x57   : > { %496 = vrot.lane.b32.xlu0 %v464_v0, %s1238_s16  ;;  %502 = vrot.lane.b32.xlu2 %v468_v4, %s1238_s16 }
  0x5e   : > { %508 = vrot.lane.b32.xlu1 %v472_v5, %s1238_s16 }
  0x5f   : > { %504 = vrot.lane.b32.xlu0 %v469_v6, %s1238_s16  ;;  %510 = vrot.lane.b32.xlu2 %v473_v7, %s1238_s16 }
  0xa1   : > { %v484_v8 = vpop.permute.xlu2 %483 }
  0xa9   : > { %v486_v11 = vpop.permute.xlu2 %485 }
  0xaa   : > { %v488_v35 = vsel %vm487_vm1, %v484_v8, %v486_v11  ;;  %v489_v36 = vsel %vm487_vm1, %v486_v11, %v484_v8 }
  0xb1   : > { %v503_v16 = vpop.permute.xlu2 %502 }
  0xb8   : > { %v491_v9 = vpop.permute.xlu1 %490 }
  0xb9   : > { %v475_v10 = vpop.permute.xlu0 %474  ;;  %v511_v34 = vpop.permute.xlu2 %510 }
  0xc0   : > { %v493_v13 = vpop.permute.xlu1 %492 }
  0xc1   : > { %v477_v14 = vpop.permute.xlu0 %476  ;;  %v494_v20 = vsel %vm480_vm0, %v491_v9, %v493_v13  ;;  %v495_v30 = vsel %vm480_vm0, %v493_v13, %v491_v9 }
  0xc2   : > { %v481_v23 = vsel %vm480_vm0, %v475_v10, %v477_v14  ;;  %v482_v24 = vsel %vm480_vm0, %v477_v14, %v475_v10  ;;  %v528_v29 = vmul.f32 %v494_v20, %v472_v5  ;;  %v529_v37 = vmul.f32 %v495_v30, %v473_v7 }
  0xc3   : > { %v516_v31 = vmul.f32 %v481_v23, %v468_v4  ;;  %v517_v32 = vmul.f32 %v482_v24, %v469_v6 }
  0xc4   : > { %v530_v38 = vadd.f32 %v528_v29, %v526_v25  ;;  %v531_v53 = vadd.f32 %v529_v37, %v527_v33 }
  0xc5   : > { %v518_v39 = vadd.f32 %v516_v31, %v514_v26  ;;  %v519_v40 = vadd.f32 %v517_v32, %v515_v28 }
  0xc8   : > { %v499_v21 = vpop.permute.xlu1 %498 }
  0xc9   : > { %v497_v22 = vpop.permute.xlu0 %496 }
  0xca   : > { %v500_v41 = vsel %vm487_vm1, %v497_v22, %v499_v21  ;;  %v501_v42 = vsel %vm487_vm1, %v499_v21, %v497_v22 }
  0xd0   : > { %v509_v43 = vpop.permute.xlu1 %508 }
  0xd1   : > { %v505_v44 = vpop.permute.xlu0 %504  ;;  %v512_v45 = vsel %vm487_vm1, %v509_v43, %v511_v34  ;;  %v513_v46 = vsel %vm487_vm1, %v511_v34, %v509_v43 }
  0xd2   : > { %v506_v47 = vsel %vm487_vm1, %v503_v16, %v505_v44  ;;  %v507_v48 = vsel %vm487_vm1, %v505_v44, %v503_v16  ;;  %v532_v49 = vmul.f32 %v513_v46, %v501_v42  ;;  %v533_v50 = vmul.f32 %v512_v45, %v500_v41 }
  0xd3   : > { %v520_v51 = vmul.f32 %v507_v48, %v489_v36  ;;  %v521_v52 = vmul.f32 %v506_v47, %v488_v35 }
  0xd4   : > { %v534_v54 = vsub.f32 %v530_v38, %v532_v49  ;;  %v535_v57 = vsub.f32 %v531_v53, %v533_v50 }
  0xd5   : > { %v522_v55 = vsub.f32 %v518_v39, %v520_v51  ;;  %v523_v56 = vsub.f32 %v519_v40, %v521_v52 }
  0xd7   : > { %524 = vst [vmem:[%s454_s10] sm:$0xff] %v522_v55 }
  0xd8   : > { %525 = vst [vmem:[%s454_s10 + $0x8] sm:$0xff] %v523_v56 }
  0xd9   : > { %1128 = shalt.err (!%p1125_p13)
}
  0xda   : > { %826 = dma.vmem_to_hbm [thread:$0]  (%p1371_p2), %s560_s13, 256, %s562_s17, %s539_s3   ;;  %536 = vst [vmem:[%s461_s15] sm:$0xff] %v534_v54 }
  0xdb   : > { %537 = vst [vmem:[%s461_s15 + $0x8] sm:$0xff] %v535_v57  ;;  %s544_s30 = scalar_lea.sflag [#allocation15], %s1397_s2  ;;  %s1143_s20 = sshra.s32 %s1445_s14, 4  ;;  %s1144_s20 = int_to_ptr.hbm [resolvable:$true] %s1143_s20 }
  0xdc   : > { %s1145_s22 = scalar_lea.hbm %s1144_s20, 16  ;;  %s1149_s9 = scalar_lea.hbm %s1502_s7, 32 }
  0xdd   : > { %p1146_p0 = scmp.ne.s32.totalorder %s1144_s20, %s1145_s22  ;;  %p1150_p8 = scmp.lt.s32.totalorder %s1144_s20, %s1502_s7 }
  0xde   : > { %p1151_p1 = scmp.lt.s32.totalorder %s1149_s9, %s1145_s22 }
  0xdf   : > { %p1147_p5 = pnand %p1146_p0, %p1371_p2 }
  0xe0   : > { %p1152_p3 = por %p1151_p1, %p1150_p8 }
  0xe1   : > { %p1148_p7 = pneg %p1147_p5 }
  0xe3   : > { %p1153_p9 = pnand %p1152_p3, %p1148_p7 }
  0xe5   : > { %1156 = shalt.err (!%p1153_p9)
}
  0xe6   : > { %827 = dma.vmem_to_hbm [thread:$0]  (%p1371_p2), %s1443_s18, 256, %s1445_s14, %s544_s30  }
  0xe7 PF: > { %s590_s2 = sand.u32 1, %s1211_s24   ;;  %p851_p10 = pnand %p778_p4, %p1378_p6 }
  0xe8   : > { %s591_s13 = scalar_lea.sflag [#allocation4], %s590_s2 }
  0xe9   : > { %p852_p11 = pneg %p851_p10 }
  0xeb   : > { %1202 = dma.done.wait (%p852_p11), %s591_s13, 256  }
  0xec   : > { %1204 = vsyncadd (%p852_p11), %s591_s13, 4294967040  ;;  %s601_s17 = scalar_lea.sflag [#allocation15], %s590_s2 }
  0xed   : > { %1206 = dma.done.wait (%p852_p11), %s601_s17, 256  }
  0xee   : > { %1208 = vsyncadd (%p852_p11), %s601_s17, 4294967040  ;;  %s32_s29 = sadd.s32 1, %s1231_s29   ;;  %s1524_s21 = sld [smem:[#allocation23_spill]] }
  0xef   : > { %p29_p12 = scmp.ge.s32.totalorder %s32_s29, 4   ;;  %s1525_s26 = sld [smem:[#allocation26_spill]] }
  0xf0   : > { %s1526_s27 = sld [smem:[#allocation24_spill]]  ;;  %s1528_s24 = smov %s1215_s25 }
  0xf1   : > { %s1527_s28 = sld [smem:[#allocation25_spill]]  ;;  %31 = sbr.rel (!%p29_p12) target bundleno = 17 (0x11), region = 139 }
  0xf4   : > { %s1529_s25 = smov %s1524_s21 }
  0xf6   :  { %607 = vsyncpa [#allocation3], 1 }
  0xf7   :  { %609 = vsyncpa [#allocation3 + $0x1], 1 }
  0xf8   :  { %610 = vsyncpa [#allocation6], 1 }
  0xf9   :  { %612 = vsyncpa [#allocation6 + $0x1], 1 }
  0xfa   :  { %613 = vsyncpa [#allocation9], 1 }
  0xfb   :  { %614 = vsyncpa [#allocation12], 1 }
  0xfc   :  { %615 = vsyncpa [#allocation4], 1 }
  0xfd   :  { %617 = vsyncpa [#allocation4 + $0x1], 1 }
  0xfe   :  { %618 = vsyncpa [#allocation15], 1 }
  0xff   :  { %620 = vsyncpa [#allocation15 + $0x1], 1 }

</bundles_post_ra>
